<compile_context>
chip_gen: v5e
topology: v5e:2x2
jax: 0.10.0
libtpu: 0.0.40
codegen_flags: <defaults>
</compile_context>

<pallas_src>
import functools

import jax
import jax.numpy as jnp
import numpy as np
from jax.experimental import pallas as pl
from jax.experimental.pallas import tpu as pltpu


def _apply_activation(h, act):
    if act == "relu":
        return jnp.maximum(h, 0.0)
    if act in ("none", "linear"):
        return h
    if act == "lrelu":
        return jnp.where(h > 0, h, 0.2 * h)
    if act == "tanh":
        return jnp.tanh(h)
    if act == "sigmoid":
        return jax.nn.sigmoid(h)
    # TODO(synk): other ConvBlock activations (and norm / weight_norm) are not
    # needed for the default ConvMLP config; add here if required.
    raise NotImplementedError(act)


def _convmlp_kernel(num_layers, activation, out_activation, x_ref, *refs):
    """refs = (wT_0, b_0, wT_1, b_1, ..., wT_{L-1}, b_{L-1}, out_ref).

    x_ref  : (TB, C_in, TILE_P)   pixels on the lane axis (compute dtype)
    wT_l   : (C_out_l, C_in_l)    transposed 1x1-conv weight (compute dtype)
    b_l    : (C_out_l, 1)         f32
    out_ref: (TB, C_out_last, TILE_P)
    """
    out_ref = refs[-1]
    tb = x_ref.shape[0]
    for bi in range(tb):                       # static unroll (tb is small)
        h = x_ref[bi]                          # (C_in, TILE_P)
        for layer in range(num_layers):
            w_t = refs[2 * layer][...]
            b = refs[2 * layer + 1][...]
            # (C_out, C_in) @ (C_in, TILE_P) -> lane-dense (C_out, TILE_P);
            # f32 accumulation on the MXU, f32 bias/activation epilogue.
            h = jnp.dot(w_t, h, preferred_element_type=jnp.float32) + b
            act = out_activation if layer == num_layers - 1 else activation
            h = _apply_activation(h, act)
        out_ref[bi] = h.astype(out_ref.dtype)


def conv_mlp_forward(x_nchw, weights, biases, *, activation="relu",
                     out_activation="none", tile_p=2048,
                     compute_dtype=jnp.bfloat16, min_grid_steps=4,
                     vmem_budget_bytes=10 * 1024 * 1024):
    """Forward pass of ConvMLP.

    x_nchw : (N, C_in, H, W)
    weights: list of (C_in_l, C_out_l) matrices (1x1 conv kernels squeezed)
    biases : list of (C_out_l,) vectors
    returns: (N, C_out_last, H, W) in x_nchw.dtype
    """
    n, c_in, hh, ww = x_nchw.shape
    num_layers = len(weights)
    assert len(biases) == num_layers
    assert weights[0].shape[0] == c_in
    c_ins = [int(w.shape[0]) for w in weights]
    c_outs = [int(w.shape[1]) for w in weights]
    c_out = c_outs[-1]
    out_dtype = x_nchw.dtype
    p = hh * ww

    if compute_dtype is None:
        compute_dtype = x_nchw.dtype
    in_bytes = np.dtype(compute_dtype).itemsize
    out_bytes = np.dtype(out_dtype).itemsize

    # ---- Tile selection (lane-dense, VMEM-budgeted, generation-agnostic) ----
    p128 = -(-p // 128) * 128
    tile = max(128, min((tile_p // 128) * 128, p128))

    def footprint(tb, t):
        # double-buffered input + output DMAs, plus rough f32 intermediates.
        io = 2 * tb * t * (c_in * in_bytes + c_out * out_bytes)
        inter = tb * t * 4 * sum(c_outs)
        return io + inter

    while tile > 128 and footprint(1, tile) > vmem_budget_bytes:
        tile = max(128, ((tile // 2) // 128) * 128)

    p_tiles = -(-p // tile)

    # Batch blocking: when a whole image fits in one pixel tile, pack several
    # images per grid step (fewer / fatter steps), but keep >= min_grid_steps
    # parallel steps so both v7x TensorCores stay busy.
    tb = 1
    if p_tiles == 1 and n > 1:
        tb = max(1, min(16, n // max(1, min_grid_steps)))
        while n % tb:                      # prefer a divisor of N (no ragged
            tb -= 1                        # batch block)
        while tb > 1 and footprint(tb, tile) > vmem_budget_bytes:
            tb -= 1
            while n % tb:
                tb -= 1
    grid = (n // tb, p_tiles)

    # ---- Operand prep (no pad, no output slice) ----
    x3d = x_nchw.reshape(n, c_in, p)               # NCHW stays put: free
    if x3d.dtype != compute_dtype:
        x3d = x3d.astype(compute_dtype)
    w_t = [jnp.asarray(w).astype(compute_dtype).T for w in weights]  # (Co,Ci)
    b_2d = [jnp.asarray(b, jnp.float32).reshape(-1, 1) for b in biases]

    kernel = functools.partial(_convmlp_kernel, num_layers, activation,
                               out_activation)

    in_specs = [pl.BlockSpec((tb, c_in, tile), lambda b, j: (b, 0, j))]
    params = []
    for wt, bb in zip(w_t, b_2d):
        # Whole-array blocks with a constant index_map: resident in VMEM for
        # every grid step.
        # TODO(synk): for much deeper MLPs pack all layers into one padded
        # (L, Co_max, Ci_max) array to cut per-array window setup.
        in_specs.append(pl.BlockSpec(wt.shape, lambda b, j: (0, 0)))
        in_specs.append(pl.BlockSpec(bb.shape, lambda b, j: (0, 0)))
        params += [wt, bb]

    flops = 2 * n * p * sum(ci * co for ci, co in zip(c_ins, c_outs))
    bytes_accessed = (n * p * (c_in * in_bytes + c_out * out_bytes)
                      + sum(int(wt.size) * in_bytes for wt in w_t)
                      + sum(int(bb.size) * 4 for bb in b_2d))

    out3d = pl.pallas_call(
        kernel,
        out_shape=jax.ShapeDtypeStruct((n, c_out, p), out_dtype),
        grid_spec=pltpu.PrefetchScalarGridSpec(
            num_scalar_prefetch=0,
            grid=grid,
            in_specs=in_specs,
            out_specs=pl.BlockSpec((tb, c_out, tile), lambda b, j: (b, 0, j)),
        ),
        compiler_params=pltpu.CompilerParams(
            dimension_semantics=("parallel", "parallel")),
        cost_estimate=pl.CostEstimate(flops=flops, transcendentals=0,
                                      bytes_accessed=bytes_accessed),
    )(x3d, *params)

    return out3d.reshape(n, c_out, hh, ww)


def _init_params(key, input_dim, dims, output_dim):
    """Deterministic Conv2d-like (kaiming-uniform-ish) init for 1x1 convs."""
    in_dims = [input_dim] + list(dims)
    out_dims = list(dims) + [output_dim]
    weights, biases = [], []
    for ci, co in zip(in_dims, out_dims):
        key, kw, kb = jax.random.split(key, 3)
        bound = 1.0 / jnp.sqrt(ci)
        weights.append(jax.random.uniform(kw, (ci, co), jnp.float32,
                                          -bound, bound))
        biases.append(jax.random.uniform(kb, (co,), jnp.float32,
                                         -bound, bound))
    return weights, biases


def _reference_forward(x_nchw, weights, biases, *, activation="relu",
                       out_activation="none", compute_dtype=jnp.bfloat16):
    """Plain-JAX reference using the same dtype preparation as the kernel."""
    n, c, hh, ww = x_nchw.shape
    if compute_dtype is None:
        compute_dtype = x_nchw.dtype
    y = x_nchw.reshape(n, c, hh * ww).astype(compute_dtype).astype(jnp.float32)
    num_layers = len(weights)
    for i, (wgt, bia) in enumerate(zip(weights, biases)):
        w_t = jnp.asarray(wgt).astype(compute_dtype).astype(jnp.float32).T
        y = jnp.einsum("oc,ncp->nop", w_t, y,
                       precision=jax.lax.Precision.HIGHEST)
        y = y + jnp.asarray(bia, jnp.float32).reshape(1, -1, 1)
        act = out_activation if i == num_layers - 1 else activation
        y = _apply_activation(y, act)
    c_out = int(weights[-1].shape[1])
    return y.reshape(n, c_out, hh, ww).astype(x_nchw.dtype)


if __name__ == "__main__":
    key = jax.random.PRNGKey(0)
    k_x, k_p = jax.random.split(key)

    # ConvMLP(input_dim=4, dims=[32, 32], output_dim=8)
    input_dim, dims, output_dim = 4, [32, 32], 8
    N, H, W = 2, 16, 16

    x = jax.random.normal(k_x, (N, input_dim, H, W), jnp.float32)
    weights, biases = _init_params(k_p, input_dim, dims, output_dim)

    out = jax.block_until_ready(conv_mlp_forward(x, weights, biases))
    assert out.shape == (N, output_dim, H, W)
    assert out.dtype == x.dtype

    # Tight check: reference with the same bf16 input/weight rounding.
    ref_same = _reference_forward(x, weights, biases)
    assert jnp.allclose(out, ref_same, atol=1e-3, rtol=1e-3)

    # Loose check: full-f32 reference (documents the bf16 bandwidth/precision
    # tradeoff; pass compute_dtype=None to conv_mlp_forward for exact f32).
    ref_f32 = _reference_forward(x, weights, biases, compute_dtype=None)
    assert jnp.allclose(out, ref_f32, atol=1e-1, rtol=1e-1)

    print("KERNEL_OK")
</pallas_src>

<mosaic_0001>
module attributes {stable_mosaic.version = 11 : i64} {
  func.func @_convmlp_kernel(%arg0: i32, %arg1: i32, %arg2: memref<1x4x256xbf16, #tpu.memory_space<vmem>>, %arg3: memref<32x4xbf16, #tpu.memory_space<vmem>>, %arg4: memref<32x1xf32, #tpu.memory_space<vmem>>, %arg5: memref<32x32xbf16, #tpu.memory_space<vmem>>, %arg6: memref<32x1xf32, #tpu.memory_space<vmem>>, %arg7: memref<8x32xbf16, #tpu.memory_space<vmem>>, %arg8: memref<8x1xf32, #tpu.memory_space<vmem>>, %arg9: memref<1x8x256xf32, #tpu.memory_space<vmem>>) attributes {dimension_semantics = [#tpu.dimension_semantics<parallel>, #tpu.dimension_semantics<parallel>], iteration_bounds = array<i64: 2, 1>, scalar_prefetch = 0 : i64, scratch_operands = 0 : i64, tpu.core_type = #tpu.core_type<tc>, window_params = [{transform_indices = @transform_0, window_bounds = array<i64: 1, 4, 256>}, {pipeline_mode = #tpu.pipeline_mode<synchronous>, transform_indices = @transform_1, window_bounds = array<i64: 32, 4>}, {pipeline_mode = #tpu.pipeline_mode<synchronous>, transform_indices = @transform_2, window_bounds = array<i64: 32, 1>}, {pipeline_mode = #tpu.pipeline_mode<synchronous>, transform_indices = @transform_3, window_bounds = array<i64: 32, 32>}, {pipeline_mode = #tpu.pipeline_mode<synchronous>, transform_indices = @transform_4, window_bounds = array<i64: 32, 1>}, {pipeline_mode = #tpu.pipeline_mode<synchronous>, transform_indices = @transform_5, window_bounds = array<i64: 8, 32>}, {pipeline_mode = #tpu.pipeline_mode<synchronous>, transform_indices = @transform_6, window_bounds = array<i64: 8, 1>}, {transform_indices = @transform_7, window_bounds = array<i64: 1, 8, 256>}]} {
    %c0 = arith.constant 0 : index
    %c0_0 = arith.constant 0 : index
    %c0_1 = arith.constant 0 : index
    %0 = vector.load %arg2[%c0, %c0_0, %c0_1] : memref<1x4x256xbf16, #tpu.memory_space<vmem>>, vector<1x4x256xbf16>
    %1 = vector.shape_cast %0 : vector<1x4x256xbf16> to vector<4x256xbf16>
    %c0_2 = arith.constant 0 : index
    %c0_3 = arith.constant 0 : index
    %2 = vector.load %arg3[%c0_2, %c0_3] : memref<32x4xbf16, #tpu.memory_space<vmem>>, vector<32x4xbf16>
    %c0_4 = arith.constant 0 : index
    %c0_5 = arith.constant 0 : index
    %3 = vector.load %arg4[%c0_4, %c0_5] : memref<32x1xf32, #tpu.memory_space<vmem>>, vector<32x1xf32>
    %cst = arith.constant dense<0.000000e+00> : vector<32x256xf32>
    %4 = tpu.matmul %2, %1, %cst {dimension_numbers = #tpu.dot_dimension_numbers<[1], [0], [0], [1], [0, 0, 1, 1], [], []>} : vector<32x4xbf16>, vector<4x256xbf16>, vector<32x256xf32> -> vector<32x256xf32>
    %5 = vector.broadcast %3 : vector<32x1xf32> to vector<32x256xf32>
    %6 = arith.addf %4, %5 : vector<32x256xf32>
    %cst_6 = arith.constant 0.000000e+00 : f32
    %7 = vector.broadcast %cst_6 : f32 to vector<32x256xf32>
    %8 = arith.maximumf %6, %7 : vector<32x256xf32>
    %c0_7 = arith.constant 0 : index
    %c0_8 = arith.constant 0 : index
    %9 = vector.load %arg5[%c0_7, %c0_8] : memref<32x32xbf16, #tpu.memory_space<vmem>>, vector<32x32xbf16>
    %c0_9 = arith.constant 0 : index
    %c0_10 = arith.constant 0 : index
    %10 = vector.load %arg6[%c0_9, %c0_10] : memref<32x1xf32, #tpu.memory_space<vmem>>, vector<32x1xf32>
    %cst_11 = arith.constant dense<0.000000e+00> : vector<32x256xf32>
    %11 = tpu.matmul %9, %8, %cst_11 {dimension_numbers = #tpu.dot_dimension_numbers<[1], [0], [0], [1], [0, 0, 1, 1], [], []>} : vector<32x32xbf16>, vector<32x256xf32>, vector<32x256xf32> -> vector<32x256xf32>
    %12 = vector.broadcast %10 : vector<32x1xf32> to vector<32x256xf32>
    %13 = arith.addf %11, %12 : vector<32x256xf32>
    %cst_12 = arith.constant 0.000000e+00 : f32
    %14 = vector.broadcast %cst_12 : f32 to vector<32x256xf32>
    %15 = arith.maximumf %13, %14 : vector<32x256xf32>
    %c0_13 = arith.constant 0 : index
    %c0_14 = arith.constant 0 : index
    %16 = vector.load %arg7[%c0_13, %c0_14] : memref<8x32xbf16, #tpu.memory_space<vmem>>, vector<8x32xbf16>
    %c0_15 = arith.constant 0 : index
    %c0_16 = arith.constant 0 : index
    %17 = vector.load %arg8[%c0_15, %c0_16] : memref<8x1xf32, #tpu.memory_space<vmem>>, vector<8x1xf32>
    %cst_17 = arith.constant dense<0.000000e+00> : vector<8x256xf32>
    %18 = tpu.matmul %16, %15, %cst_17 {dimension_numbers = #tpu.dot_dimension_numbers<[1], [0], [0], [1], [0, 0, 1, 1], [], []>} : vector<8x32xbf16>, vector<32x256xf32>, vector<8x256xf32> -> vector<8x256xf32>
    %19 = vector.broadcast %17 : vector<8x1xf32> to vector<8x256xf32>
    %20 = arith.addf %18, %19 : vector<8x256xf32>
    %c0_18 = arith.constant 0 : index
    %c0_19 = arith.constant 0 : index
    %c0_20 = arith.constant 0 : index
    %21 = vector.load %arg9[%c0_18, %c0_19, %c0_20] : memref<1x8x256xf32, #tpu.memory_space<vmem>>, vector<1x8x256xf32>
    %22 = vector.shape_cast %21 : vector<1x8x256xf32> to vector<8x256xf32>
    %23 = vector.shape_cast %20 : vector<8x256xf32> to vector<1x8x256xf32>
    tpu.vector_store %arg9[%c0_18, %c0_19, %c0_20], %23 {strides = array<i32>} : memref<1x8x256xf32, #tpu.memory_space<vmem>>, vector<1x8x256xf32>,
    return
  }
  func.func @transform_0(%arg0: i32, %arg1: i32) -> (i32, i32, i32) {
    %c0_i32 = arith.constant 0 : i32
    %c0_i32_0 = arith.constant 0 : i32
    return %arg0, %c0_i32, %arg1 : i32, i32, i32
  }
  func.func @transform_1(%arg0: i32, %arg1: i32) -> (i32, i32) {
    %c0_i32 = arith.constant 0 : i32
    %c0_i32_0 = arith.constant 0 : i32
    %c0_i32_1 = arith.constant 0 : i32
    return %c0_i32, %c0_i32_0 : i32, i32
  }
  func.func @transform_2(%arg0: i32, %arg1: i32) -> (i32, i32) {
    %c0_i32 = arith.constant 0 : i32
    %c0_i32_0 = arith.constant 0 : i32
    %c0_i32_1 = arith.constant 0 : i32
    return %c0_i32, %c0_i32_0 : i32, i32
  }
  func.func @transform_3(%arg0: i32, %arg1: i32) -> (i32, i32) {
    %c0_i32 = arith.constant 0 : i32
    %c0_i32_0 = arith.constant 0 : i32
    %c0_i32_1 = arith.constant 0 : i32
    return %c0_i32, %c0_i32_0 : i32, i32
  }
  func.func @transform_4(%arg0: i32, %arg1: i32) -> (i32, i32) {
    %c0_i32 = arith.constant 0 : i32
    %c0_i32_0 = arith.constant 0 : i32
    %c0_i32_1 = arith.constant 0 : i32
    return %c0_i32, %c0_i32_0 : i32, i32
  }
  func.func @transform_5(%arg0: i32, %arg1: i32) -> (i32, i32) {
    %c0_i32 = arith.constant 0 : i32
    %c0_i32_0 = arith.constant 0 : i32
    %c0_i32_1 = arith.constant 0 : i32
    return %c0_i32, %c0_i32_0 : i32, i32
  }
  func.func @transform_6(%arg0: i32, %arg1: i32) -> (i32, i32) {
    %c0_i32 = arith.constant 0 : i32
    %c0_i32_0 = arith.constant 0 : i32
    %c0_i32_1 = arith.constant 0 : i32
    return %c0_i32, %c0_i32_0 : i32, i32
  }
  func.func @transform_7(%arg0: i32, %arg1: i32) -> (i32, i32, i32) {
    %c0_i32 = arith.constant 0 : i32
    %c0_i32_0 = arith.constant 0 : i32
    return %arg0, %c0_i32, %arg1 : i32, i32, i32
  }
}

</mosaic_0001>

<bundles_post_ra>
// kernel: tpu_custom_call.1
= control target key start
LH: loop header
LB: loop body
LE: loop exit
PB: predicated region body
PF: predicated region fallthrough
CT: control target
= control target key end

     0   :  { %12 = vsyncpa [#allocation3], 0  ;;  %s1036_s0 = inlined_call_operand.vmem [shape: bf16[2,4,256], index: 0, kind: input, shape index: {}]   ;;  %s1037_s1 = inlined_call_operand.vmem [shape: bf16[32,4], index: 1, kind: input, shape index: {}]   ;;  %s1038_s2 = inlined_call_operand.vmem [shape: f32[32,1], index: 2, kind: input, shape index: {}]   ;;  %s1039_s3 = inlined_call_operand.vmem [shape: bf16[32,32], index: 3, kind: input, shape index: {}]   ;;  %s1040_s4 = inlined_call_operand.vmem [shape: f32[32,1], index: 4, kind: input, shape index: {}]   ;;  %s1041_s5 = inlined_call_operand.vmem [shape: bf16[8,32], index: 5, kind: input, shape index: {}]   ;;  %s1042_s6 = inlined_call_operand.vmem [shape: f32[8,1], index: 6, kind: input, shape index: {}]   ;;  %s1043_s7 = inlined_call_operand.hbm [shape: f32[2,8,256], index: 7, kind: output, shape index: {}]  }
   0x1   :  { %14 = vsyncpa [#allocation3 + $0x1], 0  ;;  %s891_s24 = smov 0   ;;  %s893_s25 = smov 0  }
   0x2   :  { %s895_s26 = smov 0   ;;  %s897_s27 = smov 0  }
   0x3   :  { %s899_s28 = smov 0   ;;  %s901_s29 = smov 0  }
   0x4 LB: > { %s666_s30 = sadd.s32 4294967295, %s848_s29   ;;  %s667_s8 = sadd.s32 4294967294, %s848_s29   ;;  %s848_s29 = sphi %s901_s29, %s20_s29   ;;  %s844_s28 = sphi %s899_s28, %s1050_s28   ;;  %s840_s27 = sphi %s897_s27, %s1049_s27   ;;  %s836_s26 = sphi %s895_s26, %s1048_s26   ;;  %s832_s25 = sphi %s893_s25, %s1047_s25   ;;  %s828_s24 = sphi %s891_s24, %s1046_s24  }
   0x5   : > { %s32_s9 = sadd.s32 1, %s844_s28  ;;  %s195_s10 = sadd.s32 1, %s836_s26 }
   0x6   : > { %p34_p0 = scmp.ge.s32.totalorder %s32_s9, 2  ;;  %p205_p1 = scmp.ne.s32.totalorder %s836_s26, %s832_s25 }
   0x7   : > { %p206_p2 = scmp.eq.s32.totalorder %s666_s30, 1  ;;  %p211_p3 = scmp.ne.s32.totalorder %s832_s25, %s828_s24 }
   0x8   : > { %s1052_s9 = smov (%p34_p0, %s32_s9), 0  ;;  %p212_p5 = scmp.eq.s32.totalorder %s667_s8, 1 }
   0x9   : > { %p931_p4 = por %p206_p2, %p205_p1  ;;  %s190_s12 = ssub.s32 %s844_s28, %s1052_s9 }
   0xa   : > { %p670_p6 = scmp.ge.s32.totalorder %s848_s29, 1  ;;  %p193_p7 = scmp.eq.s32.totalorder %s190_s12, 0 }
   0xb   : > { %p938_p8 = por %p212_p5, %p211_p3  ;;  %p261_p9 = scmp.lt.s32.totalorder %s848_s29, 3 }
   0xc   : > { %s944_s14 = scalar_select %p193_p7, %s836_s26, %s195_s10  }
   0xd   : > { %p262_p10 = pnand %p670_p6, %p261_p9 }
   0xe   : > { %p298_p11 = scmp.lt.s32.totalorder (!%p262_p10), %s840_s27, 1  ;;  %s294_s22 = sand.u32 (!%p262_p10), 1, %s832_s25  }
   0xf   : > { %265 = sbr.rel (%p262_p10) target bundleno = 499 (0x1f3), region = 48  ;;  %s671_s30 = sshll.u32 (!%p262_p10), %s294_s22, 4 }
  0x10   : > { %s296_s15 = scalar_lea.vmem (!%p262_p10), [#allocation2], %s671_s30  ;;  %s572_s18 = scalar_lea.sflag (!%p262_p10), [#allocation3], %s294_s22 }
  0x11   : > { %s587_s16 = sshll.u32 (!%p262_p10), %s296_s15, 4  ;;  %s588_s16 = int_to_ptr.vmem [resolvable:$true] %s587_s16 }
  0x14   : > { %v315_v0 = vld [vmem:[%s1038_s2 + $0x8] sm:$0xff]  ;;  %v850_v1 = vmov 0   ;;  %v317_v2 = vld [vmem:[%s1038_s2 + $0x18] sm:$0xff]  ;;  %s299_s19 = scalar_select %p298_p11, %s840_s27, 1  ;;  %v314_v4 = vld [vmem:[%s1038_s2] sm:$0xff]  ;;  %vm359_vm0 = vcmask 1041408  }
  0x15   : > { %768 = vset.pattern.permute.xlu1 %v850_v1  ;;  %767 = vset.pattern.permute.xlu0 %v850_v1  ;;  %v316_v5 = vld [vmem:[%s1038_s2 + $0x10] sm:$0xff]  ;;  %v706_v10 = vld [vmem:[%s1037_s1] sm:$0xff]  ;;  %v415_v11 = vld [vmem:[%s1040_s4 + $0x8] sm:$0xff]  ;;  %vm352_vm1 = vcmask 31744   ;;  %vm448_vm2 = vcmask 261120  }
  0x16   : > { %325 = vperm.xlu1 %768, %v315_v0   ;;  %335 = vperm.xlu0 %767, %v317_v2   ;;  %s705_s20 = sshll.u32 %s299_s19, 2  ;;  %v414_v12 = vld [vmem:[%s1040_s4] sm:$0xff]  ;;  %v707_v13 = vld [vmem:[%s1037_s1 + $0x8] sm:$0xff]  ;;  %v417_v22 = vld [vmem:[%s1040_s4 + $0x18] sm:$0xff] }
  0x17   : > { %769 = vset.pattern.permute.xlu2 %v850_v1  ;;  %s305_s23 = scalar_lea.vmem %s1036_s0, %s705_s20  ;;  %v416_v35 = vld [vmem:[%s1040_s4 + $0x10] sm:$0xff]  ;;  %v708_v42 = vld [vmem:[%s1039_s3] sm:$0xff]  ;;  %v709_v46 = vld [vmem:[%s1039_s3 + $0x8] sm:$0xff] }
  0x18   : > { %v309_v3 = vld [vmem:[%s305_s23] sm:$0xf]  ;;  %435 = vperm.xlu2 %769, %v417_v22   ;;  %s710_s23 = sshll.u32 %s840_s27, 4 }
  0x19   : > { %349 = vst [vmem:[#allocation1] ss:$4 sm:$0xff] %v309_v3  ;;  %v518_v45 = vld [vmem:[%s1042_s6] sm:$0xff]  ;;  %s585_s12 = scalar_lea.hbm %s1043_s7, %s710_s23  ;;  %s790_s23 = scalar_lea.hbm %s1043_s7, 32 }
  0x1a   : > { %s589_s17 = sshll.u32 %s585_s12, 4  ;;  %s590_s17 = int_to_ptr.hbm [resolvable:$true] %s589_s17 }
  0x1b   : > { %s784_s27 = sshra.s32 %s590_s17, 4  ;;  %s785_s27 = int_to_ptr.hbm [resolvable:$true] %s784_s27 }
  0x1c   : > { %s786_s19 = scalar_lea.hbm %s785_s27, 16  ;;  %p791_p1 = scmp.lt.s32.totalorder %s785_s27, %s1043_s7 }
  0x1d   : > { %p787_p12 = scmp.ne.s32.totalorder %s785_s27, %s786_s19  ;;  %p792_p2 = scmp.lt.s32.totalorder %s790_s23, %s786_s19 }
  0x1e   : > { %320 = vperm.xlu1 %768, %v314_v4   ;;  %330 = vperm.xlu0 %767, %v316_v5  }
  0x1f   : > { %p788_p13 = pnand %p787_p12, %p931_p4  ;;  %p793_p3 = por %p792_p2, %p791_p1 }
  0x20   : > { %v350_v6 = vld.sshfl [vmem:[#allocation1] sm:$0xff pattern:$0x73625140]  ;;  %v351_v7 = vld.sshfl [vmem:[#allocation1 + $0x8] sm:$0xff pattern:$0x73625140]  ;;  %430 = vperm.xlu2 %769, %v416_v35  }
  0x21   : > { %v360_v8 = vsel %vm359_vm0, %v350_v6, 0  ;;  %v362_v9 = vsel %vm359_vm0, %v351_v7, 0  ;;  %p789_p0 = pneg %p788_p13 }
  0x22   : > { %371 = vmatpush.bf16.msra.mxu0 %v360_v8  ;;  %390 = vmatpush.bf16.msra.mxu1 %v362_v9 }
  0x23   : > { %p794_p5 = pnand %p793_p3, %p789_p0 }
  0x25   : > { %682 = vmatmul.msk.bf16.vlgmr.msra.gmra.mxu0 %vm352_vm1, %v706_v10  ;;  %684 = vmatmul.msk.bf16.vlgmr.msra.gmra.mxu1 %vm352_vm1, %v706_v10 }
  0x26   : > { %425 = vperm.xlu0 %767, %v415_v11   ;;  %420 = vperm.xlu1 %768, %v414_v12   ;;  %v517_v11 = vld [vmem:[%s1041_s5] sm:$0xf] }
  0x28   : > { %521 = vperm.xlu2 %769, %v518_v45  }
  0x35   : > { %683 = vmatmul.msk.bf16.gmra.mxu0 %vm352_vm1, %v707_v13  ;;  %685 = vmatmul.msk.bf16.gmra.mxu1 %vm352_vm1, %v707_v13 }
  0x72   : > { %v436_v51 = vpop.permute.xlu2 %435 }
  0x7a   : > { %v431_v54 = vpop.permute.xlu2 %430 }
  0x82   : > { %v522_v12 = vpop.permute.xlu2 %521 }
  0x88   : > { %v336_v18 = vpop.permute.xlu0 %335  ;;  %v326_v19 = vpop.permute.xlu1 %325 }
  0x90   : > { %v331_v23 = vpop.permute.xlu0 %330  ;;  %v321_v30 = vpop.permute.xlu1 %320 }
  0x98   : > { %v426_v61 = vpop.permute.xlu0 %425  ;;  %v421_v2 = vpop.permute.xlu1 %420 }
  0xa2   : > { %v373_v14 = vpop.f32.mrf.mxu0  ;;  %v392_v15 = vpop.f32.mrf.mxu1 }
  0xa3   : > { %v374_v36 = vadd.f32 %v373_v14, %v321_v30  ;;  %v393_v37 = vadd.f32 %v392_v15, %v321_v30 }
  0xa5   : > { %v402_v43 = vmax.f32 %v374_v36, 0.0  ;;  %v403_v44 = vmax.f32 %v393_v37, 0.0 }
  0xaa   : > { %v375_v16 = vpop.f32.mrf.mxu0  ;;  %v394_v17 = vpop.f32.mrf.mxu1 }
  0xab   : > { %v376_v31 = vadd.f32 %v375_v16, %v326_v19  ;;  %v395_v32 = vadd.f32 %v394_v17, %v326_v19 }
  0xad   : > { %v404_v40 = vmax.f32 %v376_v31, 0.0  ;;  %v405_v41 = vmax.f32 %v395_v32, 0.0 }
  0xb2   : > { %v378_v20 = vpop.f32.mrf.mxu0  ;;  %v397_v21 = vpop.f32.mrf.mxu1 }
  0xb3   : > { %v379_v26 = vadd.f32 %v378_v20, %v331_v23  ;;  %v398_v27 = vadd.f32 %v397_v21, %v331_v23 }
  0xb5   : > { %v406_v38 = vmax.f32 %v379_v26, 0.0  ;;  %v407_v39 = vmax.f32 %v398_v27, 0.0 }
  0xba   : > { %v380_v24 = vpop.f32.mrf.mxu0  ;;  %v399_v25 = vpop.f32.mrf.mxu1 }
  0xbb   : > { %v381_v28 = vadd.f32 %v380_v24, %v336_v18  ;;  %v400_v29 = vadd.f32 %v399_v25, %v336_v18 }
  0xbd   : > { %v408_v33 = vmax.f32 %v381_v28, 0.0  ;;  %v409_v34 = vmax.f32 %v400_v29, 0.0 }
  0xbf   : > { %467 = vmatpush.msra.mxu2 %v408_v33  ;;  %494 = vmatpush.msra.mxu3 %v409_v34 }
  0xc1   : > { %468 = vmatpush.msra.mxu2 %v406_v38  ;;  %495 = vmatpush.msra.mxu3 %v407_v39 }
  0xc3   : > { %469 = vmatpush.msra.mxu2 %v404_v40  ;;  %496 = vmatpush.msra.mxu3 %v405_v41 }
  0xc5   : > { %470 = vmatpush.msra.mxu2 %v402_v43  ;;  %497 = vmatpush.msra.mxu3 %v403_v44 }
  0xc6   : > { %694 = vmatmul.msk.bf16.vlgmr.msra.gmra.mxu2 %vm448_vm2, %v708_v42  ;;  %696 = vmatmul.msk.bf16.vlgmr.msra.gmra.mxu3 %vm448_vm2, %v708_v42 }
  0xd6   : > { %695 = vmatmul.msk.bf16.gmra.mxu2 %vm448_vm2, %v709_v46  ;;  %697 = vmatmul.msk.bf16.gmra.mxu3 %vm448_vm2, %v709_v46 }
 0x149   : > { %v472_v47 = vpop.f32.mrf.mxu2  ;;  %v499_v48 = vpop.f32.mrf.mxu3 }
 0x14a   : > { %v473_v3 = vadd.f32 %v472_v47, %v421_v2  ;;  %v500_v4 = vadd.f32 %v499_v48, %v421_v2 }
 0x14c   : > { %v509_v9 = vmax.f32 %v473_v3, 0.0  ;;  %v510_v10 = vmax.f32 %v500_v4, 0.0 }
 0x151   : > { %v474_v49 = vpop.f32.mrf.mxu2  ;;  %v501_v50 = vpop.f32.mrf.mxu3 }
 0x152   : > { %v475_v62 = vadd.f32 %v474_v49, %v426_v61  ;;  %v502_v63 = vadd.f32 %v501_v50, %v426_v61 }
 0x154   : > { %v511_v7 = vmax.f32 %v475_v62, 0.0  ;;  %v512_v8 = vmax.f32 %v502_v63, 0.0 }
 0x159   : > { %v477_v52 = vpop.f32.mrf.mxu2  ;;  %v504_v53 = vpop.f32.mrf.mxu3 }
 0x15a   : > { %v478_v57 = vadd.f32 %v477_v52, %v431_v54  ;;  %v505_v58 = vadd.f32 %v504_v53, %v431_v54 }
 0x15c   : > { %v513_v5 = vmax.f32 %v478_v57, 0.0  ;;  %v514_v6 = vmax.f32 %v505_v58, 0.0 }
 0x161   : > { %v479_v55 = vpop.f32.mrf.mxu2  ;;  %v506_v56 = vpop.f32.mrf.mxu3 }
 0x162   : > { %v480_v59 = vadd.f32 %v479_v55, %v436_v51  ;;  %v507_v60 = vadd.f32 %v506_v56, %v436_v51 }
 0x164   : > { %v515_v0 = vmax.f32 %v480_v59, 0.0  ;;  %v516_v1 = vmax.f32 %v507_v60, 0.0 }
 0x166   : > { %539 = vmatpush.msrb.mxu0 %v515_v0  ;;  %560 = vmatpush.msrb.mxu1 %v516_v1 }
 0x168   : > { %540 = vmatpush.msrb.mxu0 %v513_v5  ;;  %561 = vmatpush.msrb.mxu1 %v514_v6 }
 0x16a   : > { %541 = vmatpush.msrb.mxu0 %v511_v7  ;;  %562 = vmatpush.msrb.mxu1 %v512_v8 }
 0x16c   : > { %542 = vmatpush.msrb.mxu0 %v509_v9  ;;  %563 = vmatpush.msrb.mxu1 %v510_v10 }
 0x16d   : > { %698 = vmatmul.msk.bf16.vlgmr.msrb.gmra.mxu0 %vm448_vm2, %v517_v11  ;;  %699 = vmatmul.msk.bf16.vlgmr.msrb.gmra.mxu1 %vm448_vm2, %v517_v11 }
 0x1ea   : > { %v544_v13 = vpop.f32.mrf.mxu0  ;;  %v565_v14 = vpop.f32.mrf.mxu1 }
 0x1eb   : > { %v545_v15 = vadd.f32 %v544_v13, %v522_v12  ;;  %v566_v16 = vadd.f32 %v565_v14, %v522_v12 }
 0x1ed   : > { %569 = vst [vmem:[%s296_s15] sm:$0xff] %v545_v15 }
 0x1ee   : > { %570 = vst [vmem:[%s296_s15 + $0x8] sm:$0xff] %v566_v16 }
 0x1ef   : > { %797 = shalt.err (!%p794_p5)
}
 0x1f0   : > { %711 = dma.vmem_to_hbm [thread:$0]  (%p931_p4), %s588_s16, 256, %s590_s17, %s572_s18  }
 0x1f2   : > { %v546_v17 = vpop.f32.mrf.mxu0  ;;  %v567_v18 = vpop.f32.mrf.mxu1 }
 0x1f3 PF: > { %p717_p6 = scmp.ge.s32.totalorder %s848_s29, 2  ;;  %s601_s22 = sand.u32 1, %s828_s24  }
 0x1f4   : > { %s602_s10 = scalar_lea.sflag [#allocation3], %s601_s22 }
 0x1f5   : > { %p714_p7 = pnand %p717_p6, %p938_p8 }
 0x1f7   : > { %p715_p9 = pneg %p714_p7 }
 0x1f9   : > { %823 = dma.done.wait (%p715_p9), %s602_s10, 256  }
 0x1fa   : > { %825 = vsyncadd (%p715_p9), %s602_s10, 4294967040  ;;  %s20_s29 = sadd.s32 1, %s848_s29   ;;  %s1046_s24 = smov %s832_s25 }
 0x1fb   : > { %p17_p10 = scmp.ge.s32.totalorder %s20_s29, 4   ;;  %s1047_s25 = smov %s836_s26 }
 0x1fc   : > { %s1048_s26 = smov %s944_s14  ;;  %s1049_s27 = smov %s844_s28 }
 0x1fd   : > { %s1050_s28 = smov %s1052_s9  ;;  %19 = sbr.rel (!%p17_p10) target bundleno = 4 (0x4), region = 83 }
 0x202   :  { %608 = vsyncpa [#allocation3], 1 }
 0x203   :  { %610 = vsyncpa [#allocation3 + $0x1], 1 }

</bundles_post_ra>
